<compile_context>
chip_gen: v7x
topology: tpu7x:2x2x1
jax: 0.10.0
libtpu: 0.0.40
codegen_flags: <defaults>
</compile_context>

<pallas_src>
import functools

import jax
import jax.numpy as jnp
from jax.experimental import pallas as pl
from jax.experimental.pallas import tpu as pltpu


def _linear_bias_kernel(x_ref, w_ref, b_ref, o_ref):
    # x_ref: (tm, Kb), w_ref: (Kb, Nb), b_ref: (1, Nb), o_ref: (tm, Nb)
    acc = jnp.dot(x_ref[...], w_ref[...], preferred_element_type=jnp.float32)
    o_ref[...] = (acc + b_ref[...]).astype(o_ref.dtype)


def _reconstruct_weight(ttensors, *, path, expr, permutation,
                        input_dim, output_dim):
    """reconstructed_forward weight glue: einsum chain -> permute -> reshape."""
    tensors = list(ttensors)
    out = None
    for (a, b), eq in zip(path, expr):
        out = jnp.einsum(eq, tensors[a], tensors[b])
        tensors[a] = out
        tensors.pop(b)
    return jnp.transpose(out, permutation).reshape(input_dim, output_dim)


def make_tensorized_linear_params(ttensors, bias, *, path, expr, permutation,
                                  input_dim, output_dim):
    """Builds the packed (block-diagonal) weight + bias.

    Hoist this out of the per-activation forward: the einsum / kron / tile glue
    is a handful of tiny XLA fusions whose launch overhead dominates the
    latency-bound small-M case if rebuilt on every call.
    """
    w = _reconstruct_weight(ttensors, path=path, expr=expr,
                            permutation=permutation,
                            input_dim=input_dim, output_dim=output_dim)
    K, N = input_dim, output_dim
    pack = 128 // K if (K <= 128 and 128 % K == 0) else 1
    w_blk = jnp.kron(jnp.eye(pack, dtype=w.dtype), w)            # (K*pack, N*pack)
    b = bias if bias is not None else jnp.zeros((N,), w.dtype)
    b_blk = jnp.tile(b, pack).reshape(1, pack * N).astype(jnp.float32)
    return {"w": w, "bias": b, "w_blk": w_blk, "b_blk": b_blk}


def tensorized_linear_apply(x, params, *, tm=4096):
    """out = x @ W + bias with the packed Pallas kernel.  Output dtype = x.dtype."""
    w, w_blk, b_blk, bias = params["w"], params["w_blk"], params["b_blk"], params["bias"]
    K, N = w.shape
    pack = w_blk.shape[0] // K           # derived from static shapes (jit-safe)
    Kb, Nb = K * pack, N * pack

    lead = x.shape[:-1]
    assert x.shape[-1] == K
    dtype = x.dtype
    x2d = x.reshape(-1, K)
    M = x2d.shape[0]
    if M == 0:
        return jnp.zeros((*lead, N), dtype)

    rem = M % pack
    M_main = M - rem

    def run_kernel(x_main_2d):
        # x_main_2d: (M_main, K) with M_main % pack == 0 -> lane-dense view.
        Mrows = x_main_2d.shape[0] // pack
        x_packed = x_main_2d.reshape(Mrows, Kb)          # row-major bitcast view
        w_use = w_blk if w_blk.dtype == dtype else w_blk.astype(dtype)

        # Row tile: fat enough (default 4096 rows = 2 MiB f32 x tile + 2 MiB
        # out tile, ~8 MiB double-buffered) to amortize the ~0.35 us
        # per-grid-step overhead on all generations and keep v7x's 3.2 TB/s
        # roofline fed; still far under every chip's VMEM budget.  tm_eff is
        # either a multiple of 8 or equal to the full first dim (the (8,128)
        # block rule); partial last tiles are bounds-masked by Pallas.
        tm_eff = min(tm, Mrows)
        if tm_eff == Mrows and Mrows >= 16:
            # Force >= 2 grid steps so the "parallel" axis can be sharded
            # across both v7x TensorCores (neutral on single-TC v5e/v6e).
            tm_eff = ((pl.cdiv(Mrows, 2) + 7) // 8) * 8
        grid_m = pl.cdiv(Mrows, tm_eff)

        act_bytes = jnp.dtype(dtype).itemsize
        cost = pl.CostEstimate(
            # True matmul work: the zero blocks of kron(I_pack, W) do no flops.
            flops=2 * (Mrows * pack) * K * N,
            transcendentals=0,
            bytes_accessed=act_bytes * (Mrows * Kb + Mrows * Nb)
                           + jnp.dtype(w_use.dtype).itemsize * Kb * Nb
                           + 4 * Nb,
        )

        out_packed = pl.pallas_call(
            _linear_bias_kernel,
            out_shape=jax.ShapeDtypeStruct((Mrows, Nb), dtype),
            grid=(grid_m,),
            in_specs=[
                pl.BlockSpec((tm_eff, Kb), lambda i: (i, 0)),
                # Constant index maps: Pallas issues the weight/bias DMAs only
                # once; the spare double buffer is ~64 KiB of VMEM (left as-is
                # -- shrinking it via pipeline_mode is hygiene, not perf).
                pl.BlockSpec((Kb, Nb), lambda i: (0, 0)),
                pl.BlockSpec((1, Nb), lambda i: (0, 0)),
            ],
            out_specs=pl.BlockSpec((tm_eff, Nb), lambda i: (i, 0)),
            compiler_params=pltpu.CompilerParams(
                # "parallel" shards the row axis across v7x's 2 TCs; plain
                # parallel is kept (vs CORE_PARALLEL) for portability.
                dimension_semantics=("parallel",),
                vmem_limit_bytes=32 * 1024 * 1024,   # v5e scoped default is 16 MiB
            ),
            cost_estimate=cost,
        )(x_packed, w_use, b_blk)
        return out_packed.reshape(x_main_2d.shape[0], N)   # bitcast back to rows

    def tail_matmul(x_tail):
        acc = jnp.dot(x_tail, w.astype(dtype), preferred_element_type=jnp.float32)
        return (acc + bias).astype(dtype)

    if rem == 0:
        out2d = run_kernel(x2d)                      # common path: no copies
    elif M_main == 0:
        # Fewer than `pack` rows total: latency-bound; plain jnp is cheapest.
        out2d = tail_matmul(x2d)
    else:
        # Remainder path: kernel on the pack-aligned prefix (reshape view of
        # the sliced prefix), tail rows via a trivial jnp matmul, single
        # concatenate.  This drops the previous full-array jnp.pad of x and
        # out[:M] slice; the prefix slice / concatenate that XLA still
        # materializes are the residual cost (a fully copy-free remainder path
        # would need a manual-DMA pl.ANY kernel).
        out_main = run_kernel(x2d[:M_main])
        out_tail = tail_matmul(x2d[M_main:])
        out2d = jnp.concatenate([out_main, out_tail], axis=0)

    return out2d.reshape(*lead, N)


def tensorized_linear_forward(x, ttensors, bias, *, path, expr, permutation,
                              input_dim, output_dim, tm=4096):
    """Convenience wrapper = reconstructed_forward + bias (use_full_contraction=False)."""
    params = make_tensorized_linear_params(
        ttensors, bias, path=path, expr=expr, permutation=permutation,
        input_dim=input_dim, output_dim=output_dim)
    return tensorized_linear_apply(x, params, tm=tm)


if __name__ == "__main__":
    key = jax.random.PRNGKey(0)
    k_x, k_g0, k_g1, k_b = jax.random.split(key, 4)

    input_dim, output_dim = 32, 32

    # Deterministic "parameters" (torch.randn / torch.rand analogues).
    g0 = jax.random.normal(k_g0, (4, 4, 2), jnp.float32)        # ttensor_0
    g1 = jax.random.normal(k_g1, (2, 8, 8), jnp.float32)        # ttensor_1
    bias = jax.random.uniform(k_b, (output_dim,), jnp.float32)

    # Example input: batch=2, seq=8, hidden=32
    x = jax.random.normal(k_x, (2, 8, input_dim), jnp.float32)

    fwd = jax.jit(functools.partial(
        tensorized_linear_forward,
        path=((0, 1),), expr=("ior,rjp->iojp",), permutation=(0, 2, 1, 3),
        input_dim=input_dim, output_dim=output_dim))

    y = jax.block_until_ready(fwd(x, (g0, g1), bias))

    # Reference (pure JAX) check of the reconstructed_forward semantics.
    w_ref = jnp.einsum("ior,rjp->iojp", g0, g1).transpose(0, 2, 1, 3)
    w_ref = w_ref.reshape(input_dim, output_dim)
    ref = x @ w_ref + bias
    assert y.shape == (2, 8, output_dim)
    assert jnp.allclose(y, ref, atol=1e-4, rtol=1e-4), float(jnp.max(jnp.abs(y - ref)))

    # TODO(synk): quant8 flag and full_contraction_forward (arbitrary
    # config-driven einsum program over the reranked input) are not
    # implemented; only the reconstructed_forward path is covered.
    print("KERNEL_OK")
</pallas_src>

<mosaic_0001>
module attributes {stable_mosaic.version = 11 : i64} {
  func.func @_linear_bias_kernel(%arg0: i32, %arg1: memref<4x128xf32, #tpu.memory_space<vmem>>, %arg2: memref<128x128xf32, #tpu.memory_space<vmem>>, %arg3: memref<1x128xf32, #tpu.memory_space<vmem>>, %arg4: memref<4x128xf32, #tpu.memory_space<vmem>>) attributes {dimension_semantics = [#tpu.dimension_semantics<parallel>], iteration_bounds = array<i64: 1>, scalar_prefetch = 0 : i64, scratch_operands = 0 : i64, tpu.core_type = #tpu.core_type<tc>, window_params = [{transform_indices = @transform_0, window_bounds = array<i64: 4, 128>}, {pipeline_mode = #tpu.pipeline_mode<synchronous>, transform_indices = @transform_1, window_bounds = array<i64: 128, 128>}, {pipeline_mode = #tpu.pipeline_mode<synchronous>, transform_indices = @transform_2, window_bounds = array<i64: 1, 128>}, {transform_indices = @transform_3, window_bounds = array<i64: 4, 128>}]} {
    %c0 = arith.constant 0 : index
    %c0_0 = arith.constant 0 : index
    %0 = vector.load %arg1[%c0, %c0_0] : memref<4x128xf32, #tpu.memory_space<vmem>>, vector<4x128xf32>
    %c0_1 = arith.constant 0 : index
    %c0_2 = arith.constant 0 : index
    %1 = vector.load %arg2[%c0_1, %c0_2] : memref<128x128xf32, #tpu.memory_space<vmem>>, vector<128x128xf32>
    %cst = arith.constant dense<0.000000e+00> : vector<4x128xf32>
    %2 = tpu.matmul %0, %1, %cst {dimension_numbers = #tpu.dot_dimension_numbers<[1], [0], [0], [1], [0, 0, 1, 1], [], []>} : vector<4x128xf32>, vector<128x128xf32>, vector<4x128xf32> -> vector<4x128xf32>
    %c0_3 = arith.constant 0 : index
    %c0_4 = arith.constant 0 : index
    %3 = vector.load %arg3[%c0_3, %c0_4] : memref<1x128xf32, #tpu.memory_space<vmem>>, vector<1x128xf32>
    %4 = vector.broadcast %3 : vector<1x128xf32> to vector<4x128xf32>
    %5 = arith.addf %2, %4 : vector<4x128xf32>
    %c0_5 = arith.constant 0 : index
    %c0_6 = arith.constant 0 : index
    %6 = vector.load %arg4[%c0_5, %c0_6] : memref<4x128xf32, #tpu.memory_space<vmem>>, vector<4x128xf32>
    tpu.vector_store %arg4[%c0_5, %c0_6], %5 {strides = array<i32>} : memref<4x128xf32, #tpu.memory_space<vmem>>, vector<4x128xf32>,
    return
  }
  func.func @transform_0(%arg0: i32) -> (i32, i32) {
    %c0_i32 = arith.constant 0 : i32
    %c0_i32_0 = arith.constant 0 : i32
    return %arg0, %c0_i32 : i32, i32
  }
  func.func @transform_1(%arg0: i32) -> (i32, i32) {
    %c0_i32 = arith.constant 0 : i32
    %c0_i32_0 = arith.constant 0 : i32
    %c0_i32_1 = arith.constant 0 : i32
    return %c0_i32, %c0_i32_0 : i32, i32
  }
  func.func @transform_2(%arg0: i32) -> (i32, i32) {
    %c0_i32 = arith.constant 0 : i32
    %c0_i32_0 = arith.constant 0 : i32
    %c0_i32_1 = arith.constant 0 : i32
    return %c0_i32, %c0_i32_0 : i32, i32
  }
  func.func @transform_3(%arg0: i32) -> (i32, i32) {
    %c0_i32 = arith.constant 0 : i32
    %c0_i32_0 = arith.constant 0 : i32
    return %arg0, %c0_i32 : i32, i32
  }
}

</mosaic_0001>

<bundles_post_ra>
// kernel: mul.4
= control target key start
LH: loop header
LB: loop body
LE: loop exit
PB: predicated region body
PF: predicated region fallthrough
CT: control target
= control target key end

     0   :  { %vm162_vm0 = vcmask 1047556   ;;  %s398_s10 = smov 24   ;;  %vm164_vm1 = vcmask 64512   ;;  %s400_s21 = smov 8   ;;  %vm201_vm2 = vcmask 261312   ;;  %vm244_vm3 = vcmask 195712   ;;  %s579_s0 = inlined_call_operand.vmem [shape: f32[4,8,4,8], index: 0, kind: input, shape index: {}]   ;;  %s580_s1 = inlined_call_operand.vmem [shape: f32[32,32], index: 1, kind: output, shape index: {}]  }
   0x1   :  { %v376_v0 = vld [vmem:[%s579_s0 + $0x1c] sm:$0xf]  ;;  %v377_v1 = vld [vmem:[%s579_s0 + $0x18] sm:$0xf]  ;;  %v378_v2 = vld [vmem:[%s579_s0 + $0x14] sm:$0xf] }
   0x2   :  { %128 = vst [vmem:[#allocation0 + $0x38] sm:$0xf] %v376_v0  ;;  %133 = vst [vmem:[#allocation0 + $0x30] sm:$0xf] %v377_v1  ;;  %v379_v3 = vld [vmem:[%s579_s0 + $0x10] sm:$0xf] }
   0x3   :  { %138 = vst [vmem:[#allocation0 + $0x28] sm:$0xf] %v378_v2  ;;  %v380_v4 = vld [vmem:[%s579_s0 + $0xc] sm:$0xf]  ;;  %v381_v5 = vld [vmem:[%s579_s0 + $0x8] sm:$0xf] }
   0x4   :  { %143 = vst [vmem:[#allocation0 + $0x20] sm:$0xf] %v379_v3  ;;  %148 = vst [vmem:[#allocation0 + $0x18] sm:$0xf] %v380_v4  ;;  %v382_v6 = vld [vmem:[%s579_s0 + $0x4] sm:$0xf] }
   0x5   :  { %153 = vst [vmem:[#allocation0 + $0x10] sm:$0xf] %v381_v5  ;;  %v158_v7 = vld [vmem:[%s579_s0] sm:$0xf]  ;;  %157 = vst [vmem:[#allocation0 + $0x8] sm:$0xf] %v382_v6 }
   0x6   :  { %159 = vst [vmem:[#allocation0] sm:$0xf] %v158_v7  ;;  %v360_v8 = vld [vmem:[%s579_s0 + $0x5c] sm:$0xf]  ;;  %v361_v9 = vld [vmem:[%s579_s0 + $0x58] sm:$0xf] }
   0x7   :  { %v362_v10 = vld [vmem:[%s579_s0 + $0x54] sm:$0xf]  ;;  %48 = vst [vmem:[#allocation0 + $0xb8] sm:$0xf] %v360_v8  ;;  %53 = vst [vmem:[#allocation0 + $0xb0] sm:$0xf] %v361_v9 }
   0x8   :  { %58 = vst [vmem:[#allocation0 + $0xa8] sm:$0xf] %v362_v10  ;;  %v363_v11 = vld [vmem:[%s579_s0 + $0x50] sm:$0xf]  ;;  %v364_v12 = vld [vmem:[%s579_s0 + $0x4c] sm:$0xf] }
   0x9   :  { %v365_v13 = vld [vmem:[%s579_s0 + $0x48] sm:$0xf]  ;;  %63 = vst [vmem:[#allocation0 + $0xa0] sm:$0xf] %v363_v11  ;;  %68 = vst [vmem:[#allocation0 + $0x98] sm:$0xf] %v364_v12 }
   0xa   :  { %73 = vst [vmem:[#allocation0 + $0x90] sm:$0xf] %v365_v13  ;;  %v366_v14 = vld [vmem:[%s579_s0 + $0x44] sm:$0xf]  ;;  %v367_v15 = vld [vmem:[%s579_s0 + $0x40] sm:$0xf] }
   0xb   :  { %v368_v16 = vld [vmem:[%s579_s0 + $0x3c] sm:$0xf]  ;;  %78 = vst [vmem:[#allocation0 + $0x88] sm:$0xf] %v366_v14  ;;  %83 = vst [vmem:[#allocation0 + $0x80] sm:$0xf] %v367_v15 }
   0xc   :  { %88 = vst [vmem:[#allocation0 + $0x78] sm:$0xf] %v368_v16  ;;  %v369_v17 = vld [vmem:[%s579_s0 + $0x38] sm:$0xf]  ;;  %v370_v18 = vld [vmem:[%s579_s0 + $0x34] sm:$0xf] }
   0xd   :  { %v371_v19 = vld [vmem:[%s579_s0 + $0x30] sm:$0xf]  ;;  %93 = vst [vmem:[#allocation0 + $0x70] sm:$0xf] %v369_v17  ;;  %98 = vst [vmem:[#allocation0 + $0x68] sm:$0xf] %v370_v18 }
   0xe   :  { %103 = vst [vmem:[#allocation0 + $0x60] sm:$0xf] %v371_v19  ;;  %v372_v20 = vld [vmem:[%s579_s0 + $0x2c] sm:$0xf]  ;;  %v373_v21 = vld [vmem:[%s579_s0 + $0x28] sm:$0xf] }
   0xf   :  { %v374_v22 = vld [vmem:[%s579_s0 + $0x24] sm:$0xf]  ;;  %108 = vst [vmem:[#allocation0 + $0x58] sm:$0xf] %v372_v20  ;;  %113 = vst [vmem:[#allocation0 + $0x50] sm:$0xf] %v373_v21 }
  0x10   :  { %118 = vst [vmem:[#allocation0 + $0x48] sm:$0xf] %v374_v22  ;;  %v375_v23 = vld [vmem:[%s579_s0 + $0x20] sm:$0xf]  ;;  %v352_v24 = vld [vmem:[%s579_s0 + $0x7c] sm:$0xf] }
  0x11   :  { %v353_v25 = vld [vmem:[%s579_s0 + $0x78] sm:$0xf]  ;;  %123 = vst [vmem:[#allocation0 + $0x40] sm:$0xf] %v375_v23  ;;  %8 = vst [vmem:[#allocation0 + $0xf8] sm:$0xf] %v352_v24 }
  0x12   :  { %v196_v26 = vld [vmem:[#allocation0 + $0x3] ss:$8 sm:$0xf0]   ;;  %13 = vst [vmem:[#allocation0 + $0xf0] sm:$0xf] %v353_v25  ;;  %vm287_vm4 = vcmask 130112  }
  0x13   :  { %v354_v27 = vld [vmem:[%s579_s0 + $0x74] sm:$0xf]  ;;  %v194_v28 = vld [vmem:[#allocation0 + $0x3] ss:$8 sm:$0xf]  }
  0x14   :  { %18 = vst [vmem:[#allocation0 + $0xe8] sm:$0xf] %v354_v27  ;;  %v355_v29 = vld [vmem:[%s579_s0 + $0x70] sm:$0xf]  ;;  %v198_v30 = vsel %vm162_vm0, %v196_v26, %v194_v28  ;;  %v356_v31 = vld [vmem:[%s579_s0 + $0x6c] sm:$0xf] }
  0x15   :  { %23 = vst [vmem:[#allocation0 + $0xe0] sm:$0xf] %v355_v29  ;;  %v357_v32 = vld [vmem:[%s579_s0 + $0x68] sm:$0xf]  ;;  %v358_v33 = vld [vmem:[%s579_s0 + $0x64] sm:$0xf]  ;;  %199 = vrot.lane.b32.xlu0 %v198_v30, %s398_s10 }
  0x16   :  { %v217_v34 = vld [vmem:[#allocation0 + $0x83] ss:$8 sm:$0xf0]   ;;  %28 = vst [vmem:[#allocation0 + $0xd8] sm:$0xf] %v356_v31 }
  0x17   :  { %33 = vst [vmem:[#allocation0 + $0xd0] sm:$0xf] %v357_v32  ;;  %38 = vst [vmem:[#allocation0 + $0xc8] sm:$0xf] %v358_v33  ;;  %v359_v35 = vld [vmem:[%s579_s0 + $0x60] sm:$0xf] }
  0x18   :  { %v215_v36 = vld [vmem:[#allocation0 + $0x83] ss:$8 sm:$0xf]   ;;  %43 = vst [vmem:[#allocation0 + $0xc0] sm:$0xf] %v359_v35  ;;  %s399_s0 = smov 16  }
  0x19   :  { %v219_v37 = vsel %vm162_vm0, %v217_v34, %v215_v36  ;;  %v206_v38 = vld [vmem:[#allocation0 + $0x43] ss:$8 sm:$0xf0]   ;;  %v237_v39 = vld [vmem:[#allocation0 + $0x2] ss:$8 sm:$0xf]  }
  0x1a   :  { %220 = vrot.lane.b32.xlu1 %v219_v37, %s398_s10  ;;  %v204_v40 = vld [vmem:[#allocation0 + $0x43] ss:$8 sm:$0xf]   ;;  %v239_v41 = vld [vmem:[#allocation0 + $0x2] ss:$8 sm:$0xf0]  }
  0x1b   :  { %v208_v42 = vsel %vm162_vm0, %v206_v38, %v204_v40  ;;  %v249_v44 = vld [vmem:[#allocation0 + $0x42] ss:$8 sm:$0xf0]   ;;  %v241_v45 = vsel %vm162_vm0, %v239_v41, %v237_v39  ;;  %v280_v52 = vld [vmem:[#allocation0 + $0x1] ss:$8 sm:$0xf]  }
  0x1c   :  { %209 = vrot.lane.b32.xlu0 %v208_v42, %s398_s10  ;;  %v228_v43 = vld [vmem:[#allocation0 + $0xc3] ss:$8 sm:$0xf0]   ;;  %v247_v46 = vld [vmem:[#allocation0 + $0x42] ss:$8 sm:$0xf]  }
  0x1d   :  { %v258_v47 = vld [vmem:[#allocation0 + $0x82] ss:$8 sm:$0xf]   ;;  %v251_v53 = vsel %vm162_vm0, %v249_v44, %v247_v46  ;;  %v282_v55 = vld [vmem:[#allocation0 + $0x1] ss:$8 sm:$0xf0]  }
  0x1e   :  { %v260_v49 = vld [vmem:[#allocation0 + $0x82] ss:$8 sm:$0xf0]   ;;  %v160_v56 = vld [vmem:[#allocation0] ss:$8 sm:$0xf]   ;;  %v284_v4 = vsel %vm162_vm0, %v282_v55, %v280_v52 }
  0x1f   :  { %v226_v48 = vld [vmem:[#allocation0 + $0xc3] ss:$8 sm:$0xf]   ;;  %v271_v51 = vld [vmem:[#allocation0 + $0xc2] ss:$8 sm:$0xf0]   ;;  %v262_v54 = vsel %vm162_vm0, %v260_v49, %v258_v47 }
  0x20   :  { %v230_v50 = vsel %vm162_vm0, %v228_v43, %v226_v48  ;;  %242 = vrot.lane.b32.xlu0 %v241_v45, %s399_s0  ;;  %v269_v57 = vld [vmem:[#allocation0 + $0xc2] ss:$8 sm:$0xf]   ;;  %v161_v58 = vld [vmem:[#allocation0] ss:$8 sm:$0xf0]  }
  0x21   :  { %231 = vrot.lane.b32.xlu1 %v230_v50, %s398_s10  ;;  %v163_v59 = vsel %vm162_vm0, %v161_v58, %v160_v56  ;;  %v176_v60 = vld [vmem:[#allocation0 + $0x80] ss:$8 sm:$0xf]   ;;  %v290_v62 = vld [vmem:[#allocation0 + $0x41] ss:$8 sm:$0xf]   ;;  %v273_v3 = vsel %vm162_vm0, %v271_v51, %v269_v57 }
  0x22   :  { %v178_v61 = vld [vmem:[#allocation0 + $0x80] ss:$8 sm:$0xf0]   ;;  %v292_v63 = vld [vmem:[#allocation0 + $0x41] ss:$8 sm:$0xf0]  }
  0x23   :  { %165 = vst.msk [vmem:[%s580_s1] sm:$0xff] %vm164_vm1, %v163_v59   ;;  %v180_v0 = vsel %vm162_vm0, %v178_v61, %v176_v60  ;;  %v167_v1 = vld [vmem:[#allocation0 + $0x40] ss:$8 sm:$0xf]   ;;  %v294_v11 = vsel %vm162_vm0, %v292_v63, %v290_v62 }
  0x24   :  { %263 = vrot.lane.b32.xlu0 %v262_v54, %s399_s0  ;;  %v169_v2 = vld [vmem:[#allocation0 + $0x40] ss:$8 sm:$0xf0]   ;;  %384 = vst.msk [vmem:[%s580_s1 + $0x10] sm:$0xff] %vm164_vm1, %v180_v0  }
  0x25   :  { %252 = vrot.lane.b32.xlu1 %v251_v53, %s399_s0  ;;  %v171_v5 = vsel %vm162_vm0, %v169_v2, %v167_v1  ;;  %v185_v6 = vld [vmem:[#allocation0 + $0xc0] ss:$8 sm:$0xf]   ;;  %v301_v8 = vld [vmem:[#allocation0 + $0x81] ss:$8 sm:$0xf]  }
  0x26   :  { %v187_v7 = vld [vmem:[#allocation0 + $0xc0] ss:$8 sm:$0xf0]   ;;  %v303_v9 = vld [vmem:[#allocation0 + $0x81] ss:$8 sm:$0xf0]  }
  0x27   :  { %383 = vst.msk [vmem:[%s580_s1 + $0x8] sm:$0xff] %vm164_vm1, %v171_v5   ;;  %v189_v10 = vsel %vm162_vm0, %v187_v7, %v185_v6  ;;  %v305_v12 = vsel %vm162_vm0, %v303_v9, %v301_v8  ;;  %v312_v13 = vld [vmem:[#allocation0 + $0xc1] ss:$8 sm:$0xf]  }
  0x28   :  { %385 = vst.msk [vmem:[%s580_s1 + $0x18] sm:$0xff] %vm164_vm1, %v189_v10   ;;  %285 = vrot.lane.b32.xlu0 %v284_v4, %s400_s21  ;;  %v314_v14 = vld [vmem:[#allocation0 + $0xc1] ss:$8 sm:$0xf0]  }
  0x29   :  { %274 = vrot.lane.b32.xlu1 %v273_v3, %s399_s0  ;;  %v316_v15 = vsel %vm162_vm0, %v314_v14, %v312_v13 }
  0x2c   :  { %306 = vrot.lane.b32.xlu0 %v305_v12, %s400_s21 }
  0x2d   :  { %295 = vrot.lane.b32.xlu1 %v294_v11, %s400_s21 }
  0x31   :  { %317 = vrot.lane.b32.xlu1 %v316_v15, %s400_s21 }
  0x87   :  { %v200_v16 = vpop.permute.xlu0 %199  }
  0x88   :  { %202 = vst.msk [vmem:[%s580_s1] sm:$0xff] %vm201_vm2, %v200_v16  }
  0x8c   :  { %v221_v17 = vpop.permute.xlu1 %220  }
  0x8d   :  { %387 = vst.msk [vmem:[%s580_s1 + $0x10] sm:$0xff] %vm201_vm2, %v221_v17  }
  0x8e   :  { %v210_v18 = vpop.permute.xlu0 %209  }
  0x8f   :  { %386 = vst.msk [vmem:[%s580_s1 + $0x8] sm:$0xff] %vm201_vm2, %v210_v18  }
  0x92   :  { %v243_v20 = vpop.permute.xlu0 %242  }
  0x93   :  { %v232_v19 = vpop.permute.xlu1 %231   ;;  %245 = vst.msk [vmem:[%s580_s1] sm:$0xff] %vm244_vm3, %v243_v20  }
  0x94   :  { %388 = vst.msk [vmem:[%s580_s1 + $0x18] sm:$0xff] %vm201_vm2, %v232_v19  }
  0x96   :  { %v264_v22 = vpop.permute.xlu0 %263  }
  0x97   :  { %v253_v21 = vpop.permute.xlu1 %252   ;;  %390 = vst.msk [vmem:[%s580_s1 + $0x10] sm:$0xff] %vm244_vm3, %v264_v22  }
  0x98   :  { %389 = vst.msk [vmem:[%s580_s1 + $0x8] sm:$0xff] %vm244_vm3, %v253_v21  }
  0x9a   :  { %v286_v24 = vpop.permute.xlu0 %285  }
  0x9b   :  { %v275_v23 = vpop.permute.xlu1 %274   ;;  %288 = vst.msk [vmem:[%s580_s1] sm:$0xff] %vm287_vm4, %v286_v24  }
  0x9c   :  { %391 = vst.msk [vmem:[%s580_s1 + $0x18] sm:$0xff] %vm244_vm3, %v275_v23  }
  0x9e   :  { %v307_v26 = vpop.permute.xlu0 %306  }
  0x9f   :  { %v296_v25 = vpop.permute.xlu1 %295   ;;  %393 = vst.msk [vmem:[%s580_s1 + $0x10] sm:$0xff] %vm287_vm4, %v307_v26  }
  0xa0   :  { %392 = vst.msk [vmem:[%s580_s1 + $0x8] sm:$0xff] %vm287_vm4, %v296_v25  }
  0xa3   :  { %v318_v27 = vpop.permute.xlu1 %317  }
  0xa4   :  { %394 = vst.msk [vmem:[%s580_s1 + $0x18] sm:$0xff] %vm287_vm4, %v318_v27  }

// kernel: tile.8
= control target key start
LH: loop header
LB: loop body
LE: loop exit
PB: predicated region body
PF: predicated region fallthrough
CT: control target
= control target key end

     0   :  { %s22_s0 = inlined_call_operand.vmem [shape: f32[32], index: 0, kind: input, shape index: {}]   ;;  %s23_s1 = inlined_call_operand.vmem [shape: f32[4,32], index: 1, kind: output, shape index: {}]  }
   0x1   :  { %v4_v0 = vld [vmem:[%s22_s0] ss:$0 sm:$0xff] }
   0x2   :  { %5 = vst [vmem:[%s23_s1] sm:$0xf] %v4_v0 }

// kernel: tile.9
= control target key start
LH: loop header
LB: loop body
LE: loop exit
PB: predicated region body
PF: predicated region fallthrough
CT: control target
= control target key end

     0   :  { %vm7_vm0 = vcmask 261120   ;;  %s37_s8 = smov 32   ;;  %s38_s9 = smov 64   ;;  %vm13_vm1 = vcmask 1048320   ;;  %vm19_vm2 = vcmask 785920   ;;  %vm25_vm3 = vcmask 523520   ;;  %s55_s0 = inlined_call_operand.vmem [shape: f32[4,32], index: 0, kind: input, shape index: {}]   ;;  %s56_s1 = inlined_call_operand.vmem [shape: f32[1,128], index: 1, kind: output, shape index: {}]  }
   0x1   :  { %v4_v0 = vld [vmem:[%s55_s0] sm:$0xf]  ;;  %s36_s0 = smov 96  }
   0x2   :  { %5 = vst [vmem:[#allocation1] sm:$0xf] %v4_v0 }
   0x9   :  { %v10_v1 = vld [vmem:[#allocation1 + $0x3] sm:$0x1]   ;;  %v22_v2 = vld [vmem:[#allocation1 + $0x1] sm:$0x1]   ;;  %v6_v3 = vld [vmem:[#allocation1] sm:$0x1]  }
   0xa   :  { %11 = vrot.lane.b32.xlu0 %v10_v1, %s36_s0  ;;  %23 = vrot.lane.b32.xlu1 %v22_v2, %s37_s8  ;;  %v16_v4 = vld [vmem:[#allocation1 + $0x2] sm:$0x1]   ;;  %8 = vst.msk [vmem:[#allocation0] sm:$0x1] %vm7_vm0, %v6_v3  }
   0xe   :  { %17 = vrot.lane.b32.xlu0 %v16_v4, %s38_s9 }
  0x7c   :  { %v12_v5 = vpop.permute.xlu0 %11   ;;  %v24_v6 = vpop.permute.xlu1 %23  }
  0x7d   :  { %14 = vst.msk [vmem:[#allocation0] sm:$0x1] %vm13_vm1, %v12_v5  }
  0x80   :  { %v18_v7 = vpop.permute.xlu0 %17  }
  0x81   :  { %20 = vst.msk [vmem:[#allocation0] sm:$0x1] %vm19_vm2, %v18_v7  }
  0x82   :  { %26 = vst.msk [vmem:[#allocation0] sm:$0x1] %vm25_vm3, %v24_v6  }
  0x89   :  { %v30_v8 = vld [vmem:[#allocation0] sm:$0x1] }
  0x8a   :  { %32 = vst [vmem:[%s56_s1] sm:$0x1] %v30_v8 }

// kernel: tensorized_linear_forward.1
= control target key start
LH: loop header
LB: loop body
LE: loop exit
PB: predicated region body
PF: predicated region fallthrough
CT: control target
= control target key end

     0   :  { %v193_v0 = vmov 0.0|0.0   ;;  %vm194_vm0 = vmmov 0   ;;  %v195_v4 = vmov 0.0   ;;  %s273_s1 = inlined_call_operand.vmem [shape: f32[128,128], index: 1, kind: input, shape index: {}]   ;;  %s274_s0 = inlined_call_operand.vmem [shape: f32[4,128], index: 0, kind: input, shape index: {}]   ;;  %s275_s2 = inlined_call_operand.vmem [shape: f32[1,128], index: 2, kind: input, shape index: {}]   ;;  %s276_s3 = inlined_call_operand.vmem [shape: f32[4,128], index: 3, kind: output, shape index: {}]  }
   0x1   :  { %166 = vmatprep.subr.bf16.mxu0 %v193_v0  ;;  %v15_v1 = vld [vmem:[%s273_s1] sm:$0xff]  ;;  %v16_v2 = vld [vmem:[%s273_s1 + $0x8] sm:$0xff]  ;;  %v17_v3 = vld [vmem:[%s273_s1 + $0x10] sm:$0xff]  ;;  %163 = vmatprep.mubr.msk.f32.mxu0 %vm194_vm0, %v195_v4 }
   0x2   :  { %v167_v5 = vpack.c.bf16 %v16_v2, %v15_v1  ;;  %v18_v6 = vld [vmem:[%s273_s1 + $0x18] sm:$0xff]  ;;  %v19_v8 = vld [vmem:[%s273_s1 + $0x20] sm:$0xff]  ;;  %v20_v9 = vld [vmem:[%s273_s1 + $0x28] sm:$0xff] }
   0x3   :  { %v170_v7 = vpack.c.bf16 %v18_v6, %v17_v3  ;;  %v173_v10 = vpack.c.bf16 %v20_v9, %v19_v8  ;;  %v21_v11 = vld [vmem:[%s273_s1 + $0x30] sm:$0xff]  ;;  %v22_v12 = vld [vmem:[%s273_s1 + $0x38] sm:$0xff]  ;;  %v23_v14 = vld [vmem:[%s273_s1 + $0x40] sm:$0xff] }
   0x4   :  { %168 = vmatpush3.bf16.msra.mxu0 %v167_v5  ;;  %v176_v13 = vpack.c.bf16 %v22_v12, %v21_v11  ;;  %v24_v15 = vld [vmem:[%s273_s1 + $0x48] sm:$0xff]  ;;  %v25_v17 = vld [vmem:[%s273_s1 + $0x50] sm:$0xff]  ;;  %v26_v18 = vld [vmem:[%s273_s1 + $0x58] sm:$0xff] }
   0x5   :  { %169 = vmatprep.subr.bf16.mxu0 %v193_v0  ;;  %v179_v16 = vpack.c.bf16 %v24_v15, %v23_v14  ;;  %v182_v19 = vpack.c.bf16 %v26_v18, %v25_v17  ;;  %v27_v20 = vld [vmem:[%s273_s1 + $0x60] sm:$0xff]  ;;  %v28_v21 = vld [vmem:[%s273_s1 + $0x68] sm:$0xff]  ;;  %v29_v23 = vld [vmem:[%s273_s1 + $0x70] sm:$0xff] }
   0x6   :  { %v185_v22 = vpack.c.bf16 %v28_v21, %v27_v20  ;;  %v30_v24 = vld [vmem:[%s273_s1 + $0x78] sm:$0xff]  ;;  %v14_v26 = vld [vmem:[%s274_s0] sm:$0xf] }
   0x7   :  { %v188_v25 = vpack.c.bf16 %v30_v24, %v29_v23  ;;  %v113_v27 = vld [vmem:[%s275_s2] ss:$0 sm:$0xff] }
   0x8   :  { %171 = vmatpush3.bf16.msra.mxu0 %v170_v7 }
   0x9   :  { %172 = vmatprep.subr.bf16.mxu0 %v193_v0 }
   0xc   :  { %174 = vmatpush3.bf16.msra.mxu0 %v173_v10 }
   0xd   :  { %175 = vmatprep.subr.bf16.mxu0 %v193_v0 }
  0x10   :  { %177 = vmatpush3.bf16.msra.mxu0 %v176_v13 }
  0x11   :  { %178 = vmatprep.subr.bf16.mxu0 %v193_v0 }
  0x14   :  { %180 = vmatpush3.bf16.msra.mxu0 %v179_v16 }
  0x15   :  { %181 = vmatprep.subr.bf16.mxu0 %v193_v0 }
  0x18   :  { %183 = vmatpush3.bf16.msra.mxu0 %v182_v19 }
  0x19   :  { %184 = vmatprep.subr.bf16.mxu0 %v193_v0 }
  0x1c   :  { %186 = vmatpush3.bf16.msra.mxu0 %v185_v22 }
  0x1d   :  { %187 = vmatprep.subr.bf16.mxu0 %v193_v0 }
  0x20   :  { %189 = vmatpush3.bf16.msra.mxu0 %v188_v25 }
  0x23   :  { %164 = vmatmul.mubr.f32.vlgmr.msra.gmra.mrb[0].mxu0 %v14_v26 }
  0xf6   :  { %v104_v28 = vpop.f32.mrb[0].mxu0 }
  0xf7   :  { %v105_v29 = vadd.f32 %v113_v27, %v104_v28  ;;  %v165_v30 = vpop.f32.mrb[1].mxu0 }
  0xf9   :  { %108 = vst [vmem:[%s276_s3] sm:$0xf] %v105_v29 }

</bundles_post_ra>
